<compile_context>
chip_gen: v5e
topology: v5e:2x2
jax: 0.10.0
libtpu: 0.0.40
codegen_flags: <defaults>
</compile_context>

<pallas_src>
import jax
import jax.numpy as jnp
import numpy as np
from jax.experimental import pallas as pl
from jax.experimental.pallas import tpu as pltpu


# --------------------------------------------------------------------------- #
# Kernel
# --------------------------------------------------------------------------- #
def _make_kernel(vpu_out: bool):
    def kernel(g1_ref,     # (tb, D1)       group features 1
               g2_ref,     # (tb, D2)       group features 2
               d_ref,      # (tb, Dd)       discrete features
               w_in_ref,   # (D_total, H)   block-diag first layer (bf16)
               b_in_ref,   # (1, H)         stacked first-layer bias (f32)
               wo_ref,     # (1, H) f32     [O==1]   or (H, O) bf16 [O large]
               bo_ref,     # (1, O)         weighted output bias sum (f32)
               out_ref):   # (tb, O)
        # Assemble the feature row in VMEM (avoids a wrapper-side concat that
        # would round-trip the dominant input stream through HBM), then cast
        # to bf16 for native-rate MXU.
        x = jnp.concatenate([g1_ref[...], g2_ref[...], d_ref[...]], axis=-1)
        x = x.astype(w_in_ref.dtype)

        # One lane-dense block-diagonal matmul -> every boosting step's hidden
        # state.  Accumulate in f32; bias + ReLU on the VPU in f32.
        h = jnp.dot(x, w_in_ref[...], preferred_element_type=jnp.float32)
        h = jnp.maximum(h + b_in_ref[...], 0.0)

        if vpu_out:
            # O == 1: an MXU matmul here would use 1/128-1/256 of its columns
            # while costing as many passes as layer 1.  VPU mul + XLU lane
            # reduce instead (free slots); output written exactly once.
            out_ref[...] = (jnp.sum(h * wo_ref[...], axis=-1, keepdims=True)
                            + bo_ref[...])
        else:
            # Lane-dense O: keep the MXU path (bf16 contraction, f32 accum).
            out_ref[...] = (jnp.dot(h.astype(wo_ref.dtype), wo_ref[...],
                                    preferred_element_type=jnp.float32)
                            + bo_ref[...])
    return kernel


# --------------------------------------------------------------------------- #
# One-time parameter preparation (hoisted out of the forward path)
# --------------------------------------------------------------------------- #
def prepare_boosted_params(model_weights, params, *, compute_dtype=jnp.bfloat16):
    """Stack per-step params (leading axis = S) into fused kernel operands.

    Call once whenever the parameters change; the forward path then only
    launches the Pallas kernel (no re-stacking / no extra XLA kernels per call).
    """
    f32 = jnp.float32
    S = model_weights.shape[0]
    D1, C = params["W1"].shape[1:]
    D2 = params["W2"].shape[1]
    Dd = params["Wd"].shape[1]
    O = params["bo"].shape[1]
    D_total = D1 + D2 + Dd
    H = S * 3 * C

    # Block-diagonal first-layer weight, step-major along the output axis:
    #   columns [s*3C      : s*3C +  C]  <- W1[s]   (rows 0:D1)
    #   columns [s*3C +  C : s*3C + 2C]  <- W2[s]   (rows D1:D1+D2)
    #   columns [s*3C + 2C : s*3C + 3C]  <- Wd[s]   (rows D1+D2:)
    z = lambda r, c: jnp.zeros((S, r, c), f32)
    row1 = jnp.concatenate([params["W1"].astype(f32), z(D1, C), z(D1, C)], axis=-1)
    row2 = jnp.concatenate([z(D2, C), params["W2"].astype(f32), z(D2, C)], axis=-1)
    row3 = jnp.concatenate([z(Dd, C), z(Dd, C), params["Wd"].astype(f32)], axis=-1)
    blk = jnp.concatenate([row1, row2, row3], axis=1)            # (S, D_total, 3C)
    w_in = blk.transpose(1, 0, 2).reshape(D_total, H).astype(compute_dtype)

    b_in = jnp.concatenate([params["b1"], params["b2"], params["bd"]],
                           axis=-1).reshape(1, H).astype(f32)    # (1, H)

    # Fold the boosting weights into the output projection / bias.
    w = model_weights.astype(f32)
    wo = (w[:, None, None] * params["Wo"].astype(f32)).reshape(H, O)
    bo = (w[:, None] * params["bo"].astype(f32)).sum(axis=0).reshape(1, O)

    if O == 1:
        wo = wo.reshape(1, H)          # row vector for the VPU/XLU reduce path
    else:
        wo = wo.astype(compute_dtype)  # MXU path

    return {
        "w_in": w_in, "b_in": b_in, "wo": wo, "bo": bo,
        "dims": {"S": S, "D1": D1, "D2": D2, "Dd": Dd, "C": C, "O": O, "H": H},
    }


# --------------------------------------------------------------------------- #
# Forward
# --------------------------------------------------------------------------- #
def _pick_batch_tile(B, batch_tile):
    """Batch tiling: large tiles amortize the ~0.35 us per-grid-step overhead;
    >=2 tiles lets the "parallel" axis shard across v7x's two TensorCores
    (neutral on single-TC v5e/v6e)."""
    tb = min(batch_tile, B)
    if tb == B and B >= 16:
        tb = ((B + 1) // 2 + 7) // 8 * 8          # ~half the batch, 8-aligned
    if tb != B:
        tb = max(8, (tb // 8) * 8)                # sublane (8) divisibility
    return tb


def boosted_mlp_forward(prepared, group_features1, group_features2,
                        discrete_features, *, batch_tile=2048):
    dims = prepared["dims"]
    D1, D2, Dd, H, O = dims["D1"], dims["D2"], dims["Dd"], dims["H"], dims["O"]
    D_total = D1 + D2 + Dd
    B = group_features1.shape[0]

    tb = _pick_batch_tile(B, batch_tile)
    grid = (pl.cdiv(B, tb),)
    vpu_out = (O == 1)

    w_in, b_in, wo, bo = (prepared["w_in"], prepared["b_in"],
                          prepared["wo"], prepared["bo"])

    return pl.pallas_call(
        _make_kernel(vpu_out),
        out_shape=jax.ShapeDtypeStruct((B, O), jnp.float32),
        grid=grid,
        in_specs=[
            pl.BlockSpec((tb, D1), lambda i: (i, 0)),
            pl.BlockSpec((tb, D2), lambda i: (i, 0)),
            pl.BlockSpec((tb, Dd), lambda i: (i, 0)),
            pl.BlockSpec((D_total, H), lambda i: (0, 0)),
            pl.BlockSpec((1, H), lambda i: (0, 0)),
            pl.BlockSpec(wo.shape, lambda i: (0, 0)),
            pl.BlockSpec((1, O), lambda i: (0, 0)),
        ],
        # O == 1 output is a masked (lane-sparse) store, but traffic is
        # negligible; pad O to a multiple of 128 if it ever grows.
        out_specs=pl.BlockSpec((tb, O), lambda i: (i, 0)),
        compiler_params=pltpu.CompilerParams(
            dimension_semantics=("parallel",)),   # batch axis -> megacore/2-TC
    )(group_features1, group_features2, discrete_features, w_in, b_in, wo, bo)


# --------------------------------------------------------------------------- #
# Pure-JAX reference mirroring the PyTorch forward semantics (f32)
# --------------------------------------------------------------------------- #
def boosted_mlp_reference(model_weights, g1, g2, d, params):
    S = model_weights.shape[0]
    preds = 0.0
    for i in range(S):
        h1 = jax.nn.relu(g1 @ params["W1"][i] + params["b1"][i])
        h2 = jax.nn.relu(g2 @ params["W2"][i] + params["b2"][i])
        hd = jax.nn.relu(d @ params["Wd"][i] + params["bd"][i])
        h = jnp.concatenate([h1, h2, hd], axis=-1)
        logits = h @ params["Wo"][i] + params["bo"][i]
        preds = preds + model_weights[i] * logits
    return preds


if __name__ == "__main__":
    # Small shapes consistent with the module's constructor arguments.
    S = 4                    # num_boosting_steps
    group_dims = (16, 24)    # group_dims
    Dd = 12                  # discrete_dim
    C = 32                   # combined_dim
    O = 1                    # logits dimension of the base model

    key = jax.random.PRNGKey(0)
    keys = jax.random.split(key, 16)

    scale = 0.1
    params = {
        "W1": scale * jax.random.normal(keys[6], (S, group_dims[0], C), jnp.float32),
        "b1": scale * jax.random.normal(keys[7], (S, C), jnp.float32),
        "W2": scale * jax.random.normal(keys[8], (S, group_dims[1], C), jnp.float32),
        "b2": scale * jax.random.normal(keys[9], (S, C), jnp.float32),
        "Wd": scale * jax.random.normal(keys[10], (S, Dd, C), jnp.float32),
        "bd": scale * jax.random.normal(keys[11], (S, C), jnp.float32),
        "Wo": scale * jax.random.normal(keys[12], (S, 3 * C, O), jnp.float32),
        "bo": scale * jax.random.normal(keys[13], (S, O), jnp.float32),
    }
    # nn.Parameter(torch.ones(S) / S)
    model_weights = jnp.ones((S,), jnp.float32) / S

    # One-time parameter stacking (outside the forward path).
    prepared = prepare_boosted_params(model_weights, params)

    # --- small batch (single tile) ------------------------------------------
    B1 = 8
    g1 = jax.random.normal(keys[0], (B1, group_dims[0]), jnp.float32)
    g2 = jax.random.normal(keys[1], (B1, group_dims[1]), jnp.float32)
    dsc = jax.random.normal(keys[2], (B1, Dd), jnp.float32)

    out = jax.block_until_ready(boosted_mlp_forward(prepared, g1, g2, dsc))
    ref = boosted_mlp_reference(model_weights, g1, g2, dsc, params)
    # bf16 compute -> loosened tolerance (f32 accumulation keeps it tight-ish).
    np.testing.assert_allclose(np.asarray(out), np.asarray(ref),
                               rtol=2e-2, atol=2e-2)

    # --- larger batch exercising grid > 1 (two tiles -> both TCs on v7x) ----
    B2 = 48
    g1b = jax.random.normal(keys[3], (B2, group_dims[0]), jnp.float32)
    g2b = jax.random.normal(keys[4], (B2, group_dims[1]), jnp.float32)
    dscb = jax.random.normal(keys[5], (B2, Dd), jnp.float32)

    outb = jax.block_until_ready(boosted_mlp_forward(prepared, g1b, g2b, dscb))
    refb = boosted_mlp_reference(model_weights, g1b, g2b, dscb, params)
    np.testing.assert_allclose(np.asarray(outb), np.asarray(refb),
                               rtol=2e-2, atol=2e-2)

    print("KERNEL_OK")
</pallas_src>

<mosaic_0001>
module attributes {stable_mosaic.version = 11 : i64} {
  func.func @kernel(%arg0: i32, %arg1: memref<8x16xf32, #tpu.memory_space<vmem>>, %arg2: memref<8x24xf32, #tpu.memory_space<vmem>>, %arg3: memref<8x12xf32, #tpu.memory_space<vmem>>, %arg4: memref<52x384xbf16, #tpu.memory_space<vmem>>, %arg5: memref<1x384xf32, #tpu.memory_space<vmem>>, %arg6: memref<1x384xf32, #tpu.memory_space<vmem>>, %arg7: memref<1x1xf32, #tpu.memory_space<vmem>>, %arg8: memref<8x1xf32, #tpu.memory_space<vmem>>) attributes {dimension_semantics = [#tpu.dimension_semantics<parallel>], iteration_bounds = array<i64: 1>, scalar_prefetch = 0 : i64, scratch_operands = 0 : i64, tpu.core_type = #tpu.core_type<tc>, window_params = [{transform_indices = @transform_0, window_bounds = array<i64: 8, 16>}, {transform_indices = @transform_1, window_bounds = array<i64: 8, 24>}, {transform_indices = @transform_2, window_bounds = array<i64: 8, 12>}, {pipeline_mode = #tpu.pipeline_mode<synchronous>, transform_indices = @transform_3, window_bounds = array<i64: 52, 384>}, {pipeline_mode = #tpu.pipeline_mode<synchronous>, transform_indices = @transform_4, window_bounds = array<i64: 1, 384>}, {pipeline_mode = #tpu.pipeline_mode<synchronous>, transform_indices = @transform_5, window_bounds = array<i64: 1, 384>}, {pipeline_mode = #tpu.pipeline_mode<synchronous>, transform_indices = @transform_6, window_bounds = array<i64: 1, 1>}, {transform_indices = @transform_7, window_bounds = array<i64: 8, 1>}]} {
    %c0 = arith.constant 0 : index
    %c0_0 = arith.constant 0 : index
    %0 = vector.load %arg1[%c0, %c0_0] : memref<8x16xf32, #tpu.memory_space<vmem>>, vector<8x16xf32>
    %c0_1 = arith.constant 0 : index
    %c0_2 = arith.constant 0 : index
    %1 = vector.load %arg2[%c0_1, %c0_2] : memref<8x24xf32, #tpu.memory_space<vmem>>, vector<8x24xf32>
    %c0_3 = arith.constant 0 : index
    %c0_4 = arith.constant 0 : index
    %2 = vector.load %arg3[%c0_3, %c0_4] : memref<8x12xf32, #tpu.memory_space<vmem>>, vector<8x12xf32>
    %3 = tpu.concatenate %0, %1, %2 in 1 : vector<8x16xf32>, vector<8x24xf32>, vector<8x12xf32> -> vector<8x52xf32>
    %4 = arith.truncf %3 : vector<8x52xf32> to vector<8x52xbf16>
    %c0_5 = arith.constant 0 : index
    %c0_6 = arith.constant 0 : index
    %5 = vector.load %arg4[%c0_5, %c0_6] : memref<52x384xbf16, #tpu.memory_space<vmem>>, vector<52x384xbf16>
    %cst = arith.constant dense<0.000000e+00> : vector<8x384xf32>
    %6 = tpu.matmul %4, %5, %cst {dimension_numbers = #tpu.dot_dimension_numbers<[1], [0], [0], [1], [0, 0, 1, 1], [], []>} : vector<8x52xbf16>, vector<52x384xbf16>, vector<8x384xf32> -> vector<8x384xf32>
    %c0_7 = arith.constant 0 : index
    %c0_8 = arith.constant 0 : index
    %7 = vector.load %arg5[%c0_7, %c0_8] : memref<1x384xf32, #tpu.memory_space<vmem>>, vector<1x384xf32>
    %8 = vector.broadcast %7 : vector<1x384xf32> to vector<8x384xf32>
    %9 = arith.addf %6, %8 : vector<8x384xf32>
    %cst_9 = arith.constant 0.000000e+00 : f32
    %10 = vector.broadcast %cst_9 : f32 to vector<8x384xf32>
    %11 = arith.maximumf %9, %10 : vector<8x384xf32>
    %c0_10 = arith.constant 0 : index
    %c0_11 = arith.constant 0 : index
    %12 = vector.load %arg6[%c0_10, %c0_11] : memref<1x384xf32, #tpu.memory_space<vmem>>, vector<1x384xf32>
    %13 = vector.broadcast %12 : vector<1x384xf32> to vector<8x384xf32>
    %14 = arith.mulf %11, %13 : vector<8x384xf32>
    %cst_12 = arith.constant dense<0.000000e+00> : vector<8xf32>
    %15 = vector.multi_reduction <add>, %14, %cst_12 [1] : vector<8x384xf32> to vector<8xf32>
    %16 = vector.shape_cast %15 : vector<8xf32> to vector<8x1xf32>
    %c0_13 = arith.constant 0 : index
    %c0_14 = arith.constant 0 : index
    %17 = vector.load %arg7[%c0_13, %c0_14] : memref<1x1xf32, #tpu.memory_space<vmem>>, vector<1x1xf32>
    %18 = vector.broadcast %17 : vector<1x1xf32> to vector<8x1xf32>
    %19 = arith.addf %16, %18 : vector<8x1xf32>
    %c0_15 = arith.constant 0 : index
    %c0_16 = arith.constant 0 : index
    %20 = vector.load %arg8[%c0_15, %c0_16] : memref<8x1xf32, #tpu.memory_space<vmem>>, vector<8x1xf32>
    tpu.vector_store %arg8[%c0_15, %c0_16], %19 {strides = array<i32>} : memref<8x1xf32, #tpu.memory_space<vmem>>, vector<8x1xf32>,
    return
  }
  func.func @transform_0(%arg0: i32) -> (i32, i32) {
    %c0_i32 = arith.constant 0 : i32
    %c0_i32_0 = arith.constant 0 : i32
    return %arg0, %c0_i32 : i32, i32
  }
  func.func @transform_1(%arg0: i32) -> (i32, i32) {
    %c0_i32 = arith.constant 0 : i32
    %c0_i32_0 = arith.constant 0 : i32
    return %arg0, %c0_i32 : i32, i32
  }
  func.func @transform_2(%arg0: i32) -> (i32, i32) {
    %c0_i32 = arith.constant 0 : i32
    %c0_i32_0 = arith.constant 0 : i32
    return %arg0, %c0_i32 : i32, i32
  }
  func.func @transform_3(%arg0: i32) -> (i32, i32) {
    %c0_i32 = arith.constant 0 : i32
    %c0_i32_0 = arith.constant 0 : i32
    %c0_i32_1 = arith.constant 0 : i32
    return %c0_i32, %c0_i32_0 : i32, i32
  }
  func.func @transform_4(%arg0: i32) -> (i32, i32) {
    %c0_i32 = arith.constant 0 : i32
    %c0_i32_0 = arith.constant 0 : i32
    %c0_i32_1 = arith.constant 0 : i32
    return %c0_i32, %c0_i32_0 : i32, i32
  }
  func.func @transform_5(%arg0: i32) -> (i32, i32) {
    %c0_i32 = arith.constant 0 : i32
    %c0_i32_0 = arith.constant 0 : i32
    %c0_i32_1 = arith.constant 0 : i32
    return %c0_i32, %c0_i32_0 : i32, i32
  }
  func.func @transform_6(%arg0: i32) -> (i32, i32) {
    %c0_i32 = arith.constant 0 : i32
    %c0_i32_0 = arith.constant 0 : i32
    %c0_i32_1 = arith.constant 0 : i32
    return %c0_i32, %c0_i32_0 : i32, i32
  }
  func.func @transform_7(%arg0: i32) -> (i32, i32) {
    %c0_i32 = arith.constant 0 : i32
    %c0_i32_0 = arith.constant 0 : i32
    return %arg0, %c0_i32 : i32, i32
  }
}

</mosaic_0001>

<bundles_post_ra>
// kernel: tpu_custom_call.1
= control target key start
LH: loop header
LB: loop body
LE: loop exit
PB: predicated region body
PF: predicated region fallthrough
CT: control target
= control target key end

     0   :  { %s496_s0 = inlined_call_operand.hbm [shape: f32[8,16], index: 0, kind: input, shape index: {}]   ;;  %s497_s1 = inlined_call_operand.hbm [shape: f32[8,24], index: 1, kind: input, shape index: {}]   ;;  %s498_s2 = inlined_call_operand.hbm [shape: f32[8,12], index: 2, kind: input, shape index: {}]   ;;  %s499_s3 = inlined_call_operand.hbm [shape: bf16[52,384], index: 3, kind: input, shape index: {}]   ;;  %s500_s4 = inlined_call_operand.vmem [shape: f32[1,384], index: 4, kind: input, shape index: {}]   ;;  %s501_s5 = inlined_call_operand.vmem [shape: f32[1,384], index: 5, kind: input, shape index: {}]   ;;  %s502_s6 = inlined_call_operand.<no memory space> [shape: f32[1,1], index: 6, kind: input, shape index: {}]   ;;  %s503_s7 = inlined_call_operand.vmem [shape: f32[8,1], index: 7, kind: output, shape index: {}]  }
   0x1   :  { %v12_v0 = vstv %s502_s6 }
   0x2   :  { %13 = vst [vmem:[#allocation2] sm:$0x1] %v12_v0 }
   0x3   :  { %14 = vsyncpa [#allocation4], 0 }
   0x4   :  { %15 = vsyncpa [#allocation6], 0  ;;  %s33_s28 = sshll.u32 %s497_s1, 4  ;;  %s34_s28 = int_to_ptr.hbm [resolvable:$true] %s33_s28 }
   0x5   :  { %16 = vsyncpa [#allocation9], 0  ;;  %s424_s29 = smov [#allocation5]   ;;  %s22_s10 = sshll.u32 %s496_s0, 4  ;;  %s23_s10 = int_to_ptr.hbm [resolvable:$true] %s22_s10 }
   0x6   :  { %s35_s30 = sshll.u32 %s424_s29, 4  ;;  %s425_s11 = smov [#allocation3]   ;;  %s36_s30 = int_to_ptr.vmem [resolvable:$true] %s35_s30 }
   0x7   :  { %38 = dma.hbm_to_vmem [thread:$0]  %s34_s28, 128, %s36_s30, [#allocation6]  }
   0x8   :  { %s24_s6 = sshll.u32 %s425_s11, 4  ;;  %s44_s14 = sshll.u32 %s498_s2, 4  ;;  %s25_s6 = int_to_ptr.vmem [resolvable:$true] %s24_s6  ;;  %s45_s14 = int_to_ptr.hbm [resolvable:$true] %s44_s14 }
   0x9   :  { %27 = dma.hbm_to_vmem [thread:$0]  %s23_s10, 128, %s25_s6, [#allocation4]  }
   0xa   :  { %s54_s16 = sshll.u32 %s499_s3, 4  ;;  %s426_s17 = smov [#allocation7]   ;;  %s55_s16 = int_to_ptr.hbm [resolvable:$true] %s54_s16 }
   0xb   :  { %s46_s18 = sshll.u32 %s426_s17, 4  ;;  %s427_s0 = smov [#allocation8]   ;;  %s47_s18 = int_to_ptr.vmem [resolvable:$true] %s46_s18 }
   0xc   :  { %49 = dma.hbm_to_vmem [thread:$0]  %s45_s14, 128, %s47_s18, [#allocation6]  }
   0xd   :  { %s56_s19 = sshll.u32 %s427_s0, 4  ;;  %s428_s20 = smov 192   ;;  %s57_s19 = int_to_ptr.vmem [resolvable:$true] %s56_s19 }
   0xe   :  { %s429_s21 = smov 12  }
   0xf   :  { %62 = dma.hbm_to_vmem [thread:$0]  %s55_s16, 1344, %s57_s19, [#allocation9], %s428_s20, %s428_s20, %s429_s21  }
  0x10   :  { %418 = dma.done.wait [#allocation4], 128  }
  0x11   :  { %419 = vsyncadd [#allocation4], 4294967168 }
  0x12   :  { %420 = dma.done.wait [#allocation6], 256  }
  0x13   :  { %421 = vsyncadd [#allocation6], 4294967040 }
  0x14   :  { %422 = dma.done.wait [#allocation9], 1344  }
  0x15   :  { %423 = vsyncadd [#allocation9], 4294965952  ;;  %v87_v1 = vld [vmem:[#allocation5] sm:$0xff]  ;;  %v114_v2 = vld [vmem:[#allocation8 + $0x48] sm:$0x33]  ;;  %s430_s2 = smov 16  }
  0x16   :  { %90 = vrot.lane.b32.xlu0 %v87_v1, %s430_s2  ;;  %v156_v3 = vunpack.c.l.b16 %v114_v2  ;;  %v157_v4 = vunpack.c.h.b16 %v114_v2  ;;  %v115_v5 = vld [vmem:[#allocation8 + $0x50] sm:$0x3]  ;;  %vm184_vm0 = vcmask 1041408   ;;  %v88_v12 = vld [vmem:[#allocation7] sm:$0xff]  ;;  %s431_s3 = smov 40   ;;  %vm97_vm1 = vcmask 130048  }
  0x17   :  { %v158_v6 = vunpack.c.l.b16 %v115_v5  ;;  %v291_v14 = vld [vmem:[#allocation8 + $0x30] sm:$0xf]  ;;  %v311_v15 = vld [vmem:[#allocation8 + $0x38] sm:$0xf0]  ;;  %v310_v16 = vld [vmem:[#allocation8 + $0x34] sm:$0xf] }
  0x18   :  { %v168_v7 = vpack.c.b16 %v156_v3, %v156_v3  ;;  %v169_v8 = vpack.c.b16 %v157_v4, %v157_v4  ;;  %v292_v17 = vor.u32 %v311_v15, %v291_v14  ;;  %v293_v18 = vld [vmem:[#allocation8 + $0x3c] sm:$0xf0]  ;;  %v299_v19 = vld [vmem:[#allocation8 + $0x38] sm:$0xf]  ;;  %v312_v20 = vld [vmem:[#allocation8 + $0x40] sm:$0xf0] }
  0x19   :  { %v170_v9 = vpack.c.b16 %v158_v6, %v158_v6  ;;  %v296_v21 = vor.u32 %v310_v16, %v293_v18  ;;  %v300_v22 = vor.u32 %v312_v20, %v299_v19  ;;  %v279_v23 = vld [vmem:[#allocation8 + $0x18] sm:$0xf]  ;;  %v308_v24 = vld [vmem:[#allocation8 + $0x20] sm:$0xf0]  ;;  %v307_v25 = vld [vmem:[#allocation8 + $0x1c] sm:$0xf] }
  0x1a   :  { %v186_v10 = vsel %vm184_vm0, %v168_v7, 0  ;;  %v189_v11 = vsel %vm184_vm0, %v169_v8, 0  ;;  %v280_v26 = vor.u32 %v308_v24, %v279_v23  ;;  %v281_v27 = vld [vmem:[#allocation8 + $0x24] sm:$0xf0]  ;;  %v287_v28 = vld [vmem:[#allocation8 + $0x20] sm:$0xf] }
  0x1b   :  { %198 = vmatpush.bf16.msra.mxu0 %v186_v10  ;;  %211 = vmatpush.bf16.msra.mxu1 %v189_v11  ;;  %v192_v13 = vsel %vm184_vm0, %v170_v9, 0  ;;  %v309_v29 = vld [vmem:[#allocation8 + $0x28] sm:$0xf0]  ;;  %v284_v30 = vor.u32 %v307_v25, %v281_v27  ;;  %v267_v32 = vld [vmem:[#allocation8] sm:$0xf]  ;;  %vm99_vm2 = vcmask 326656  }
  0x1c   :  { %224 = vmatpush.bf16.msra.mxu2 %v192_v13  ;;  %v288_v31 = vor.u32 %v309_v29, %v287_v28  ;;  %v305_v33 = vld [vmem:[#allocation8 + $0x8] sm:$0xf0]  ;;  %v304_v34 = vld [vmem:[#allocation8 + $0x4] sm:$0xf]  ;;  %v269_v36 = vld [vmem:[#allocation8 + $0xc] sm:$0xf0] }
  0x1d   :  { %v268_v35 = vor.u32 %v305_v33, %v267_v32  ;;  %v275_v37 = vld [vmem:[#allocation8 + $0x8] sm:$0xf]  ;;  %v306_v38 = vld [vmem:[#allocation8 + $0x10] sm:$0xf0]  ;;  %v272_v39 = vor.u32 %v304_v34, %v269_v36  ;;  %vm180_vm3 = vcmask 424960   ;;  %vm256_vm4 = vcmask 7168  }
  0x1e   :  { %94 = vrot.lane.b32.xlu0 %v88_v12, %s431_s3  ;;  %v276_v40 = vor.u32 %v306_v38, %v275_v37  ;;  %v86_v42 = vld [vmem:[#allocation3] sm:$0xff]  ;;  %v321_v8 = vld [vmem:[#allocation2] ss:$0 sm:$0xff] }
  0x1f   :  { %199 = vmatpush.bf16.msra.mxu0 %v292_v17  ;;  %212 = vmatpush.bf16.msra.mxu1 %v296_v21  ;;  %v116_v47 = vld [vmem:[%s500_s4] sm:$0x7] }
  0x20   :  { %225 = vmatpush.bf16.msra.mxu2 %v300_v22  ;;  %v118_v48 = vperm.slane %v116_v47, 0  ;;  %v119_v49 = vperm.slane %v116_v47, 1  ;;  %v236_v51 = vld [vmem:[%s501_s5] sm:$0x7]  ;;  %v120_v59 = vperm.slane %v116_v47, 2 }
  0x21   :  { %v238_v55 = vperm.slane %v236_v51, 0  ;;  %v239_v58 = vperm.slane %v236_v51, 1  ;;  %v240_v2 = vperm.slane %v236_v51, 2 }
  0x23   :  { %200 = vmatpush.bf16.msra.mxu0 %v280_v26  ;;  %213 = vmatpush.bf16.msra.mxu1 %v284_v30 }
  0x24   :  { %226 = vmatpush.bf16.msra.mxu2 %v288_v31 }
  0x27   :  { %201 = vmatpush.bf16.msra.mxu0 %v268_v35  ;;  %214 = vmatpush.bf16.msra.mxu1 %v272_v39 }
  0x28   :  { %227 = vmatpush.bf16.msra.mxu2 %v276_v40 }
  0x88   :  { %v91_v41 = vpop.permute.xlu0 %90 }
  0x89   :  { %v98_v43 = vsel %vm97_vm1, %v86_v42, %v91_v41 }
  0x90   :  { %v95_v44 = vpop.permute.xlu0 %94 }
  0x91   :  { %v100_v45 = vsel %vm99_vm2, %v98_v43, %v95_v44 }
  0x92   :  { %v101_v46 = vpack.c.bf16 %v100_v45, %v100_v45 }
  0x94   :  { %301 = vmatmul.msk.bf16.vlgmr.msra.gmra.mxu0 %vm180_vm3, %v101_v46  ;;  %302 = vmatmul.msk.bf16.vlgmr.msra.gmra.mxu1 %vm180_vm3, %v101_v46 }
  0x95   :  { %303 = vmatmul.msk.bf16.vlgmr.msra.gmra.mxu2 %vm180_vm3, %v101_v46 }
 0x111   :  { %v203_v50 = vpop.f32.mrf.mxu0  ;;  %v216_v52 = vpop.f32.mrf.mxu1 }
 0x112   :  { %v204_v53 = vadd.f32 %v203_v50, %v118_v48  ;;  %v217_v54 = vadd.f32 %v216_v52, %v119_v49 }
 0x114   :  { %v233_v56 = vmax.f32 %v204_v53, 0.0  ;;  %v234_v57 = vmax.f32 %v217_v54, 0.0 }
 0x116   :  { %v244_v61 = vmul.f32 %v238_v55, %v233_v56  ;;  %v245_v62 = vmul.f32 %v239_v58, %v234_v57 }
 0x118   :  { %v229_v60 = vpop.f32.mrf.mxu2  ;;  %v247_v5 = vadd.f32 %v245_v62, %v244_v61 }
 0x119   :  { %v230_v63 = vadd.f32 %v229_v60, %v120_v59  ;;  %v205_v0 = vpop.f32.mrf.mxu0  ;;  %v218_v1 = vpop.f32.mrf.mxu1 }
 0x11b   :  { %v235_v3 = vmax.f32 %v230_v63, 0.0 }
 0x11d   :  { %v246_v4 = vmul.f32 %v240_v2, %v235_v3 }
 0x11f   :  { %v248_v6 = vadd.f32 %v247_v5, %v246_v4 }
 0x120   :  { %v231_v7 = vpop.f32.mrf.mxu2 }
 0x121   :  { %249 = vadd.xlane.f32.xlu1 %v248_v6 }
 0x194   :  { %v250_v9 = vpop.xlane.xlu1 %249 }
 0x195   :  { %v255_v10 = vadd.f32 %v321_v8, %v250_v9 }
 0x197   :  { %257 = vst.msk [vmem:[%s503_s7] sm:$0xff] %vm256_vm4, %v255_v10 }
 0x198   :  { %262 = vsyncpa [#allocation4], 1 }
 0x199   :  { %263 = vsyncpa [#allocation6], 1 }
 0x19a   :  { %264 = vsyncpa [#allocation9], 1 }

</bundles_post_ra>
